<compile_context>
chip_gen: v6e
topology: v6e:2x2x1
jax: 0.10.0
libtpu: 0.0.40
codegen_flags: <defaults>
</compile_context>

<pallas_src>
import jax
import jax.numpy as jnp
from jax.experimental import pallas as pl
from jax.experimental.pallas import tpu as pltpu

_F32 = jnp.float32


# ---------------------------------------------------------------------------
# Fused ShortcutLayer kernel: one (C, tile_n) slab of positions per grid step.
# ---------------------------------------------------------------------------
def _shortcut_kernel(x_ref, w1_ref, b1_ref, w2_ref, b2_ref,
                     s1_ref, t1_ref, s2_ref, t2_ref, out_ref):
    """Eval-mode ShortcutLayer:

        x  = x + dropout1(x)                  -> x + x        (dropout = id)
        x  = norm1(x)                         -> x*s1 + t1    (folded BN)
        x2 = conv2(dropout2(relu(conv1(x))))
        x  = x + dropout3(x2)
        x  = norm2(x)                         -> x*s2 + t2
    """
    x = x_ref[0]                                           # (C, tile_n)
    v = x + x                                              # x + dropout1(x)
    v = v * s1_ref[...] + t1_ref[...]                      # norm1
    h = jnp.dot(w1_ref[...], v,                            # conv1: (H,C)@(C,tn)
                preferred_element_type=jnp.float32) + b1_ref[...]
    h = jnp.maximum(h, 0.0)                                # ReLU (dropout2 = id)
    x2 = jnp.dot(w2_ref[...], h,                           # conv2: (C,H)@(H,tn)
                 preferred_element_type=jnp.float32) + b2_ref[...]
    v = v + x2                                             # x + dropout3(x2)
    out_ref[0] = v * s2_ref[...] + t2_ref[...]             # norm2


def shortcut_forward(x, params, *, tile_n=None):
    """x: (B, C, N) float32 -> (B, C, N) float32."""
    B, C, N = x.shape
    w1, b1, w2, b2, s1, t1, s2, t2 = params
    H = w1.shape[0]

    # Lane-dense tiling of the position axis: pick the largest 128-multiple
    # tile that divides N; fall back to one full-extent block for ragged N.
    if tile_n is None:
        if N % 256 == 0 and N >= 512:
            tile_n = 256
        elif N % 128 == 0:
            tile_n = 128
        else:
            tile_n = N
    assert N % tile_n == 0
    grid = (B, N // tile_n)

    x_spec = pl.BlockSpec((1, C, tile_n), lambda b, n: (b, 0, n))

    def const(shape):
        # Whole-array block, same tile every step -> weights stay in VMEM.
        return pl.BlockSpec(shape, lambda b, n: (0, 0))

    return pl.pallas_call(
        _shortcut_kernel,
        out_shape=jax.ShapeDtypeStruct((B, C, N), _F32),
        grid=grid,
        in_specs=[x_spec,
                  const((H, C)), const((H, 1)),
                  const((C, H)), const((C, 1)),
                  const((C, 1)), const((C, 1)),
                  const((C, 1)), const((C, 1))],
        out_specs=x_spec,
        compiler_params=pltpu.CompilerParams(
            dimension_semantics=("parallel", "parallel")),
    )(x, w1, b1, w2, b2, s1, t1, s2, t2)


# ---------------------------------------------------------------------------
# Pure-JAX reference (same eval-mode semantics) for correctness checking.
# ---------------------------------------------------------------------------
def shortcut_ref(x, params):
    w1, b1, w2, b2, s1, t1, s2, t2 = params
    v = x + x
    v = v * s1[None] + t1[None]
    h = jnp.maximum(jnp.einsum("hc,bcn->bhn", w1, v) + b1[None], 0.0)
    x2 = jnp.einsum("ch,bhn->bcn", w2, h) + b2[None]
    v = v + x2
    return v * s2[None] + t2[None]


# ---------------------------------------------------------------------------
# Deterministic synthetic parameters.
# ---------------------------------------------------------------------------
def _fold_bn(key, c, eps=1e-5):
    # TODO(synk): BatchNorm1d is folded for inference; training-mode batch
    # statistics / running-stat updates are not modeled.
    k1, k2, k3, k4 = jax.random.split(key, 4)
    gamma = 1.0 + 0.1 * jax.random.normal(k1, (c, 1), _F32)
    beta = 0.1 * jax.random.normal(k2, (c, 1), _F32)
    mean = 0.1 * jax.random.normal(k3, (c, 1), _F32)
    var = 1.0 + 0.2 * jnp.abs(jax.random.normal(k4, (c, 1), _F32))
    scale = gamma / jnp.sqrt(var + eps)
    bias = beta - mean * scale
    return scale, bias


def init_params(key, input_channels, hidden_channels):
    kw1, kb1, kw2, kb2, kn1, kn2 = jax.random.split(key, 6)
    w1 = jax.random.normal(kw1, (hidden_channels, input_channels), _F32) \
        / jnp.sqrt(jnp.asarray(input_channels, _F32))
    b1 = 0.1 * jax.random.normal(kb1, (hidden_channels, 1), _F32)
    w2 = jax.random.normal(kw2, (input_channels, hidden_channels), _F32) \
        / jnp.sqrt(jnp.asarray(hidden_channels, _F32))
    b2 = 0.1 * jax.random.normal(kb2, (input_channels, 1), _F32)
    s1, t1 = _fold_bn(kn1, input_channels)
    s2, t2 = _fold_bn(kn2, input_channels)
    return (w1, b1, w2, b2, s1, t1, s2, t2)


if __name__ == "__main__":
    key = jax.random.PRNGKey(0)
    B, C, N, H = 2, 64, 256, 128        # (batch, channels, positions, hidden)
    kx, kp = jax.random.split(key)
    x = jax.random.normal(kx, (B, C, N), _F32)
    params = init_params(kp, C, H)

    out = shortcut_forward(x, params)
    out = jax.block_until_ready(out)

    assert out.shape == (B, C, N), out.shape
    assert bool(jnp.all(jnp.isfinite(out)))
    ref = shortcut_ref(x, params)
    assert bool(jnp.allclose(out, ref, rtol=1e-4, atol=1e-4)), \
        float(jnp.max(jnp.abs(out - ref)))
    print("KERNEL_OK")
</pallas_src>

<mosaic_0001>
module attributes {stable_mosaic.version = 11 : i64} {
  func.func @_shortcut_kernel(%arg0: i32, %arg1: i32, %arg2: memref<1x64x128xf32, #tpu.memory_space<vmem>>, %arg3: memref<128x64xf32, #tpu.memory_space<vmem>>, %arg4: memref<128x1xf32, #tpu.memory_space<vmem>>, %arg5: memref<64x128xf32, #tpu.memory_space<vmem>>, %arg6: memref<64x1xf32, #tpu.memory_space<vmem>>, %arg7: memref<64x1xf32, #tpu.memory_space<vmem>>, %arg8: memref<64x1xf32, #tpu.memory_space<vmem>>, %arg9: memref<64x1xf32, #tpu.memory_space<vmem>>, %arg10: memref<64x1xf32, #tpu.memory_space<vmem>>, %arg11: memref<1x64x128xf32, #tpu.memory_space<vmem>>) attributes {dimension_semantics = [#tpu.dimension_semantics<parallel>, #tpu.dimension_semantics<parallel>], iteration_bounds = array<i64: 2, 2>, scalar_prefetch = 0 : i64, scratch_operands = 0 : i64, tpu.core_type = #tpu.core_type<tc>, window_params = [{transform_indices = @transform_0, window_bounds = array<i64: 1, 64, 128>}, {pipeline_mode = #tpu.pipeline_mode<synchronous>, transform_indices = @transform_1, window_bounds = array<i64: 128, 64>}, {pipeline_mode = #tpu.pipeline_mode<synchronous>, transform_indices = @transform_2, window_bounds = array<i64: 128, 1>}, {pipeline_mode = #tpu.pipeline_mode<synchronous>, transform_indices = @transform_3, window_bounds = array<i64: 64, 128>}, {pipeline_mode = #tpu.pipeline_mode<synchronous>, transform_indices = @transform_4, window_bounds = array<i64: 64, 1>}, {pipeline_mode = #tpu.pipeline_mode<synchronous>, transform_indices = @transform_5, window_bounds = array<i64: 64, 1>}, {pipeline_mode = #tpu.pipeline_mode<synchronous>, transform_indices = @transform_6, window_bounds = array<i64: 64, 1>}, {pipeline_mode = #tpu.pipeline_mode<synchronous>, transform_indices = @transform_7, window_bounds = array<i64: 64, 1>}, {pipeline_mode = #tpu.pipeline_mode<synchronous>, transform_indices = @transform_8, window_bounds = array<i64: 64, 1>}, {transform_indices = @transform_9, window_bounds = array<i64: 1, 64, 128>}]} {
    %c0 = arith.constant 0 : index
    %c0_0 = arith.constant 0 : index
    %c0_1 = arith.constant 0 : index
    %0 = vector.load %arg2[%c0, %c0_0, %c0_1] : memref<1x64x128xf32, #tpu.memory_space<vmem>>, vector<1x64x128xf32>
    %1 = vector.shape_cast %0 : vector<1x64x128xf32> to vector<64x128xf32>
    %2 = arith.addf %1, %1 : vector<64x128xf32>
    %c0_2 = arith.constant 0 : index
    %c0_3 = arith.constant 0 : index
    %3 = vector.load %arg7[%c0_2, %c0_3] : memref<64x1xf32, #tpu.memory_space<vmem>>, vector<64x1xf32>
    %4 = vector.broadcast %3 : vector<64x1xf32> to vector<64x128xf32>
    %5 = arith.mulf %2, %4 : vector<64x128xf32>
    %c0_4 = arith.constant 0 : index
    %c0_5 = arith.constant 0 : index
    %6 = vector.load %arg8[%c0_4, %c0_5] : memref<64x1xf32, #tpu.memory_space<vmem>>, vector<64x1xf32>
    %7 = vector.broadcast %6 : vector<64x1xf32> to vector<64x128xf32>
    %8 = arith.addf %5, %7 : vector<64x128xf32>
    %c0_6 = arith.constant 0 : index
    %c0_7 = arith.constant 0 : index
    %9 = vector.load %arg3[%c0_6, %c0_7] : memref<128x64xf32, #tpu.memory_space<vmem>>, vector<128x64xf32>
    %cst = arith.constant dense<0.000000e+00> : vector<128x128xf32>
    %10 = tpu.matmul %9, %8, %cst {dimension_numbers = #tpu.dot_dimension_numbers<[1], [0], [0], [1], [0, 0, 1, 1], [], []>} : vector<128x64xf32>, vector<64x128xf32>, vector<128x128xf32> -> vector<128x128xf32>
    %c0_8 = arith.constant 0 : index
    %c0_9 = arith.constant 0 : index
    %11 = vector.load %arg4[%c0_8, %c0_9] : memref<128x1xf32, #tpu.memory_space<vmem>>, vector<128x1xf32>
    %12 = vector.broadcast %11 : vector<128x1xf32> to vector<128x128xf32>
    %13 = arith.addf %10, %12 : vector<128x128xf32>
    %cst_10 = arith.constant 0.000000e+00 : f32
    %14 = vector.broadcast %cst_10 : f32 to vector<128x128xf32>
    %15 = arith.maximumf %13, %14 : vector<128x128xf32>
    %c0_11 = arith.constant 0 : index
    %c0_12 = arith.constant 0 : index
    %16 = vector.load %arg5[%c0_11, %c0_12] : memref<64x128xf32, #tpu.memory_space<vmem>>, vector<64x128xf32>
    %cst_13 = arith.constant dense<0.000000e+00> : vector<64x128xf32>
    %17 = tpu.matmul %16, %15, %cst_13 {dimension_numbers = #tpu.dot_dimension_numbers<[1], [0], [0], [1], [0, 0, 1, 1], [], []>} : vector<64x128xf32>, vector<128x128xf32>, vector<64x128xf32> -> vector<64x128xf32>
    %c0_14 = arith.constant 0 : index
    %c0_15 = arith.constant 0 : index
    %18 = vector.load %arg6[%c0_14, %c0_15] : memref<64x1xf32, #tpu.memory_space<vmem>>, vector<64x1xf32>
    %19 = vector.broadcast %18 : vector<64x1xf32> to vector<64x128xf32>
    %20 = arith.addf %17, %19 : vector<64x128xf32>
    %21 = arith.addf %8, %20 : vector<64x128xf32>
    %c0_16 = arith.constant 0 : index
    %c0_17 = arith.constant 0 : index
    %22 = vector.load %arg9[%c0_16, %c0_17] : memref<64x1xf32, #tpu.memory_space<vmem>>, vector<64x1xf32>
    %23 = vector.broadcast %22 : vector<64x1xf32> to vector<64x128xf32>
    %24 = arith.mulf %21, %23 : vector<64x128xf32>
    %c0_18 = arith.constant 0 : index
    %c0_19 = arith.constant 0 : index
    %25 = vector.load %arg10[%c0_18, %c0_19] : memref<64x1xf32, #tpu.memory_space<vmem>>, vector<64x1xf32>
    %26 = vector.broadcast %25 : vector<64x1xf32> to vector<64x128xf32>
    %27 = arith.addf %24, %26 : vector<64x128xf32>
    %c0_20 = arith.constant 0 : index
    %c0_21 = arith.constant 0 : index
    %c0_22 = arith.constant 0 : index
    %28 = vector.load %arg11[%c0_20, %c0_21, %c0_22] : memref<1x64x128xf32, #tpu.memory_space<vmem>>, vector<1x64x128xf32>
    %29 = vector.shape_cast %28 : vector<1x64x128xf32> to vector<64x128xf32>
    %30 = vector.shape_cast %27 : vector<64x128xf32> to vector<1x64x128xf32>
    tpu.vector_store %arg11[%c0_20, %c0_21, %c0_22], %30 {strides = array<i32>} : memref<1x64x128xf32, #tpu.memory_space<vmem>>, vector<1x64x128xf32>,
    return
  }
  func.func @transform_0(%arg0: i32, %arg1: i32) -> (i32, i32, i32) {
    %c0_i32 = arith.constant 0 : i32
    %c0_i32_0 = arith.constant 0 : i32
    return %arg0, %c0_i32, %arg1 : i32, i32, i32
  }
  func.func @transform_1(%arg0: i32, %arg1: i32) -> (i32, i32) {
    %c0_i32 = arith.constant 0 : i32
    %c0_i32_0 = arith.constant 0 : i32
    %c0_i32_1 = arith.constant 0 : i32
    return %c0_i32, %c0_i32_0 : i32, i32
  }
  func.func @transform_2(%arg0: i32, %arg1: i32) -> (i32, i32) {
    %c0_i32 = arith.constant 0 : i32
    %c0_i32_0 = arith.constant 0 : i32
    %c0_i32_1 = arith.constant 0 : i32
    return %c0_i32, %c0_i32_0 : i32, i32
  }
  func.func @transform_3(%arg0: i32, %arg1: i32) -> (i32, i32) {
    %c0_i32 = arith.constant 0 : i32
    %c0_i32_0 = arith.constant 0 : i32
    %c0_i32_1 = arith.constant 0 : i32
    return %c0_i32, %c0_i32_0 : i32, i32
  }
  func.func @transform_4(%arg0: i32, %arg1: i32) -> (i32, i32) {
    %c0_i32 = arith.constant 0 : i32
    %c0_i32_0 = arith.constant 0 : i32
    %c0_i32_1 = arith.constant 0 : i32
    return %c0_i32, %c0_i32_0 : i32, i32
  }
  func.func @transform_5(%arg0: i32, %arg1: i32) -> (i32, i32) {
    %c0_i32 = arith.constant 0 : i32
    %c0_i32_0 = arith.constant 0 : i32
    %c0_i32_1 = arith.constant 0 : i32
    return %c0_i32, %c0_i32_0 : i32, i32
  }
  func.func @transform_6(%arg0: i32, %arg1: i32) -> (i32, i32) {
    %c0_i32 = arith.constant 0 : i32
    %c0_i32_0 = arith.constant 0 : i32
    %c0_i32_1 = arith.constant 0 : i32
    return %c0_i32, %c0_i32_0 : i32, i32
  }
  func.func @transform_7(%arg0: i32, %arg1: i32) -> (i32, i32) {
    %c0_i32 = arith.constant 0 : i32
    %c0_i32_0 = arith.constant 0 : i32
    %c0_i32_1 = arith.constant 0 : i32
    return %c0_i32, %c0_i32_0 : i32, i32
  }
  func.func @transform_8(%arg0: i32, %arg1: i32) -> (i32, i32) {
    %c0_i32 = arith.constant 0 : i32
    %c0_i32_0 = arith.constant 0 : i32
    %c0_i32_1 = arith.constant 0 : i32
    return %c0_i32, %c0_i32_0 : i32, i32
  }
  func.func @transform_9(%arg0: i32, %arg1: i32) -> (i32, i32, i32) {
    %c0_i32 = arith.constant 0 : i32
    %c0_i32_0 = arith.constant 0 : i32
    return %arg0, %c0_i32, %arg1 : i32, i32, i32
  }
}

</mosaic_0001>

<bundles_post_ra>
// kernel: tpu_custom_call.1
= control target key start
LH: loop header
LB: loop body
LE: loop exit
PB: predicated region body
PF: predicated region fallthrough
CT: control target
= control target key end

     0   :  { %14 = vsyncpa [#allocation4], 0  ;;  %s2121_s0 = inlined_call_operand.vmem [shape: f32[2,64,256], index: 0, kind: input, shape index: {}]   ;;  %s2122_s1 = inlined_call_operand.vmem [shape: f32[128,64], index: 1, kind: input, shape index: {}]   ;;  %s2123_s2 = inlined_call_operand.vmem [shape: f32[128,1], index: 2, kind: input, shape index: {}]   ;;  %s2124_s3 = inlined_call_operand.vmem [shape: f32[64,128], index: 3, kind: input, shape index: {}]   ;;  %s2125_s4 = inlined_call_operand.vmem [shape: f32[64,1], index: 4, kind: input, shape index: {}]   ;;  %s2126_s5 = inlined_call_operand.vmem [shape: f32[64,1], index: 5, kind: input, shape index: {}]   ;;  %s2127_s6 = inlined_call_operand.vmem [shape: f32[64,1], index: 6, kind: input, shape index: {}]   ;;  %s2128_s7 = inlined_call_operand.vmem [shape: f32[64,1], index: 7, kind: input, shape index: {}]   ;;  %s2129_s8 = inlined_call_operand.vmem [shape: f32[64,1], index: 8, kind: input, shape index: {}]   ;;  %s2130_s9 = inlined_call_operand.hbm [shape: f32[2,64,256], index: 9, kind: output, shape index: {}]  }
   0x1   :  { %16 = vsyncpa [#allocation4 + $0x1], 0  ;;  %s1638_s30 = smov 0   ;;  %s1640_s10 = smov 0  }
   0x2   :  { %s1642_s11 = smov 0   ;;  %s1644_s12 = smov 0  }
   0x3   :  { %s1646_s13 = smov 0   ;;  %s1648_s14 = smov 0  }
   0x4   :  { %s1650_s15 = smov 0   ;;  %s1652_s16 = smov 0  }
   0x5 LB: > { %s1249_s17 = sadd.s32 4294967295, %s1581_s16   ;;  %s1250_s18 = sadd.s32 4294967294, %s1581_s16   ;;  %s1581_s16 = sphi %s1652_s16, %s22_s16   ;;  %s1577_s15 = sphi %s1650_s15, %s2151_s15   ;;  %s1573_s14 = sphi %s1648_s14, %s2150_s14   ;;  %s1569_s13 = sphi %s1646_s13, %s2149_s13   ;;  %s1565_s12 = sphi %s1644_s12, %s2148_s12   ;;  %s1561_s11 = sphi %s1642_s11, %s2147_s11   ;;  %s1557_s10 = sphi %s1640_s10, %s2146_s10   ;;  %s1553_s30 = sphi %s1638_s30, %s2145_s30  }
   0x6   : > { %s31_s19 = sadd.s32 1, %s1573_s14  ;;  %s34_s20 = sadd.s32 1, %s1577_s15 }
   0x7   : > { %p32_p0 = scmp.ge.s32.totalorder %s31_s19, 2  ;;  %p50_p1 = scmp.ne.s32.totalorder %s1561_s11, %s1557_s10 }
   0x8   : > { %p51_p2 = scmp.eq.s32.totalorder %s1581_s16, 0  ;;  %p250_p5 = scmp.eq.s32.totalorder %s1249_s17, 3 }
   0x9   : > { %s2153_s19 = smov (%p32_p0, %s31_s19), 0  ;;  %s2155_s20 = smov (!%p32_p0, %s34_s20), %s1577_s15 }
   0xa   : > { %2135 = sst [smem:[#allocation6_spill]] %s2153_s19  ;;  %s39_s21 = ssub.s32 %s1573_s14, %s2153_s19 }
   0xb   : > { %p1690_p3 = por %p51_p2, %p50_p1  ;;  %p36_p4 = scmp.ge.s32.totalorder %s2155_s20, 2 }
   0xc   : > { %p255_p6 = scmp.ne.s32.totalorder %s1557_s10, %s1553_s30  ;;  %p256_p7 = scmp.eq.s32.totalorder %s1250_s18, 3 }
   0xd   : > { %s2157_s20 = smov (%p36_p4, %s2155_s20), 0  ;;  %p1698_p8 = por %p250_p5, %p50_p1 }
   0xe   : > { %2137 = sst [smem:[#allocation7_spill]] %s2157_s20  ;;  %p1702_p9 = por %p256_p7, %p255_p6 }
   0xf   : > { %s38_s25 = ssub.s32 %s1577_s15, %s2157_s20  ;;  %s43_s27 = sadd.s32 1, %s1561_s11 }
  0x10   : > { %s2139_s24 = scalar_select %p1702_p9, 1, 0 }
  0x11   : > { %s40_s26 = sor.u32 %s39_s21, %s38_s25  ;;  %p1252_p11 = scmp.ge.s32.totalorder %s1581_s16, 4 }
  0x12   : > { %2140 = sst [smem:[#allocation8_spill]] %s2139_s24  ;;  %p41_p10 = scmp.eq.s32.totalorder %s40_s26, 0 }
  0x13   : > { %296 = sbr.rel (%p1252_p11) target bundleno = 34 (0x22), region = 48 }
  0x14   : > { %s1710_s28 = scalar_select %p41_p10, %s1561_s11, %s43_s27  }
  0x18   : > { %299 = sbr.rel (!%p1690_p3) target bundleno = 34 (0x22), region = 52  ;;  %s301_s29 = sand.u32 (%p1690_p3), 1, %s1561_s11  }
  0x19   : > { %s1254_s17 = sshll.u32 (%p1690_p3), %s1577_s15, 4  ;;  %s1253_s18 = sshll.u32 (%p1690_p3), %s301_s29, 6 }
  0x1a   : > { %s305_s19 = sadd.s32 (%p1690_p3), %s1573_s14, %s1254_s17  ;;  %s303_s26 = scalar_lea.vmem (%p1690_p3), [#allocation2], %s1253_s18 }
  0x1b   : > { %s1255_s24 = sshll.u32 (%p1690_p3), %s305_s19, 3 }
  0x1c   : > { %s307_s25 = scalar_lea.vmem (%p1690_p3), %s2121_s0, %s1255_s24 }
  0x1d   : > { %v350_v0 = vld [vmem:[%s307_s25] sm:$0xff]  ;;  %v352_v1 = vld [vmem:[%s307_s25 + $0x10] sm:$0xff] }
  0x1e   : > { %v354_v2 = vld [vmem:[%s307_s25 + $0x20] sm:$0xff]  ;;  %351 = vst [vmem:[%s303_s26] sm:$0xff] %v350_v0  ;;  %353 = vst [vmem:[%s303_s26 + $0x8] sm:$0xff] %v352_v1  ;;  %v356_v3 = vld [vmem:[%s307_s25 + $0x30] sm:$0xff] }
  0x1f   : > { %355 = vst [vmem:[%s303_s26 + $0x10] sm:$0xff] %v354_v2  ;;  %v358_v4 = vld [vmem:[%s307_s25 + $0x40] sm:$0xff]  ;;  %v360_v5 = vld [vmem:[%s307_s25 + $0x50] sm:$0xff]  ;;  %357 = vst [vmem:[%s303_s26 + $0x18] sm:$0xff] %v356_v3 }
  0x20   : > { %359 = vst [vmem:[%s303_s26 + $0x20] sm:$0xff] %v358_v4  ;;  %361 = vst [vmem:[%s303_s26 + $0x28] sm:$0xff] %v360_v5  ;;  %v362_v6 = vld [vmem:[%s307_s25 + $0x60] sm:$0xff]  ;;  %v364_v7 = vld [vmem:[%s307_s25 + $0x70] sm:$0xff] }
  0x21   : > { %363 = vst [vmem:[%s303_s26 + $0x30] sm:$0xff] %v362_v6  ;;  %365 = vst [vmem:[%s303_s26 + $0x38] sm:$0xff] %v364_v7 }
  0x22 PF: > { %p1256_p12 = scmp.ge.s32.totalorder %s1581_s16, 1  ;;  %p370_p13 = scmp.lt.s32.totalorder %s1581_s16, 5 }
  0x24   : > { %p371_p0 = pnand %p1256_p12, %p370_p13 }
  0x25   : > { %s2134_s27 = sand.u32 (!%p371_p0), 1, %s1557_s10   ;;  %s2141_s19 = sand.u32 (!%p371_p0), 1, %s1557_s10  }
  0x26   : > { %374 = sbr.rel (%p371_p0) target bundleno = 690 (0x2b2), region = 90  ;;  %s1898_s29 = sshll.u32 (!%p371_p0), %s2134_s27, 6 }
  0x27   : > { %s1901_s17 = scalar_lea.vmem (!%p371_p0), [#allocation2], %s1898_s29  ;;  %s2043_s27 = scalar_lea.vmem (!%p371_p0), [#allocation3], %s1898_s29 }
  0x28   : > { %s1276_s29 = sshll.u32 (!%p371_p0), %s1569_s13, 4  ;;  %s1166_s13 = sshll.u32 (!%p371_p0), %s2043_s27, 4  ;;  %s2058_s13 = int_to_ptr.vmem [resolvable:$true] %s1166_s13 }
  0x29   : > { %s1163_s18 = sadd.s32 (!%p371_p0), %s1565_s12, %s1276_s29  ;;  %s2070_s20 = scalar_lea.sflag (!%p371_p0), [#allocation4], %s2141_s19 }
  0x2a   : > { %s1277_s21 = sshll.u32 (!%p371_p0), %s1163_s18, 7  ;;  %s1489_s22 = scalar_lea.vmem (!%p371_p0), %s2058_s13, 1024 }
  0x2b   : > { %v491_v8 = vld [vmem:[%s2127_s6 + $0x38] sm:$0xff]  ;;  %v1583_v10 = vmov 0   ;;  %v434_v11 = vld [vmem:[%s2126_s5 + $0x30] sm:$0xff]  ;;  %v433_v12 = vld [vmem:[%s2126_s5 + $0x28] sm:$0xff]  ;;  %vm652_vm0 = vcmask 523264   ;;  %s2064_s26 = scalar_lea.hbm %s2130_s9, %s1277_s21  ;;  %p1490_p1 = scmp.ne.s32.totalorder %s2058_s13, %s1489_s22 }
  0x2c   : > { %v435_v9 = vld [vmem:[%s2126_s5 + $0x38] sm:$0xff]  ;;  %1488 = vset.pattern.permute.xlu1 %v1583_v10  ;;  %1487 = vset.pattern.permute.xlu0 %v1583_v10  ;;  %v490_v13 = vld [vmem:[%s2127_s6 + $0x30] sm:$0xff]  ;;  %v432_v14 = vld [vmem:[%s2126_s5 + $0x20] sm:$0xff]  ;;  %s1584_s24 = smov [#allocation3]  }
  0x2d   : > { %529 = vperm.xlu1 %1488, %v491_v8   ;;  %473 = vperm.xlu0 %1487, %v435_v9   ;;  %v489_v15 = vld [vmem:[%s2127_s6 + $0x28] sm:$0xff]  ;;  %v431_v16 = vld [vmem:[%s2126_s5 + $0x18] sm:$0xff]  ;;  %v488_v17 = vld [vmem:[%s2127_s6 + $0x20] sm:$0xff]  ;;  %p1491_p2 = pnand %p1490_p1, %p1698_p8 }
  0x2e   : > { %v430_v18 = vld [vmem:[%s2126_s5 + $0x10] sm:$0xff]  ;;  %v487_v19 = vld [vmem:[%s2127_s6 + $0x18] sm:$0xff]  ;;  %v429_v20 = vld [vmem:[%s2126_s5 + $0x8] sm:$0xff] }
  0x2f   : > { %v486_v21 = vld [vmem:[%s2127_s6 + $0x10] sm:$0xff]  ;;  %v428_v22 = vld [vmem:[%s2126_s5] sm:$0xff]  ;;  %v485_v23 = vld [vmem:[%s2127_s6 + $0x8] sm:$0xff]  ;;  %p1492_p3 = pneg %p1491_p2 }
  0x30   : > { %v484_v24 = vld [vmem:[%s2127_s6] sm:$0xff]  ;;  %v571_v26 = vld [vmem:[%s2123_s2 + $0x78] sm:$0xff]  ;;  %v570_v27 = vld [vmem:[%s2123_s2 + $0x70] sm:$0xff] }
  0x31   : > { %468 = vperm.xlu0 %1487, %v434_v11   ;;  %463 = vperm.xlu1 %1488, %v433_v12   ;;  %v540_v25 = vld [vmem:[%s2122_s1] sm:$0xff]  ;;  %v569_v28 = vld [vmem:[%s2123_s2 + $0x68] sm:$0xff]  ;;  %v567_v30 = vld [vmem:[%s2123_s2 + $0x58] sm:$0xff] }
  0x32   : > { %1344 = vmatprep.mubr.msk.f32.mxu0 %vm652_vm0, %v540_v25  ;;  %v568_v29 = vld [vmem:[%s2123_s2 + $0x60] sm:$0xff]  ;;  %v566_v31 = vld [vmem:[%s2123_s2 + $0x50] sm:$0xff]  ;;  %v565_v32 = vld [vmem:[%s2123_s2 + $0x48] sm:$0xff] }
  0x33   : > { %v564_v33 = vld [vmem:[%s2123_s2 + $0x40] sm:$0xff]  ;;  %v563_v34 = vld [vmem:[%s2123_s2 + $0x38] sm:$0xff]  ;;  %v562_v35 = vld [vmem:[%s2123_s2 + $0x30] sm:$0xff] }
  0x34   : > { %v561_v36 = vld [vmem:[%s2123_s2 + $0x28] sm:$0xff]  ;;  %v560_v37 = vld [vmem:[%s2123_s2 + $0x20] sm:$0xff]  ;;  %v559_v38 = vld [vmem:[%s2123_s2 + $0x18] sm:$0xff] }
  0x35   : > { %524 = vperm.xlu0 %1487, %v490_v13   ;;  %458 = vperm.xlu1 %1488, %v432_v14   ;;  %v558_v39 = vld [vmem:[%s2123_s2 + $0x10] sm:$0xff]  ;;  %v557_v40 = vld [vmem:[%s2123_s2 + $0x8] sm:$0xff]  ;;  %v556_v41 = vld [vmem:[%s2123_s2] sm:$0xff] }
  0x36   : > { %v870_v42 = vld [vmem:[%s2125_s4] sm:$0xff]  ;;  %v871_v43 = vld [vmem:[%s2125_s4 + $0x8] sm:$0xff]  ;;  %v872_v44 = vld [vmem:[%s2125_s4 + $0x10] sm:$0xff] }
  0x37   : > { %v873_v45 = vld [vmem:[%s2125_s4 + $0x18] sm:$0xff]  ;;  %v874_v46 = vld [vmem:[%s2125_s4 + $0x20] sm:$0xff]  ;;  %v875_v47 = vld [vmem:[%s2125_s4 + $0x28] sm:$0xff] }
  0x38   : > { %v876_v48 = vld [vmem:[%s2125_s4 + $0x30] sm:$0xff]  ;;  %v877_v49 = vld [vmem:[%s2125_s4 + $0x38] sm:$0xff]  ;;  %v1031_v50 = vld [vmem:[%s2128_s7] sm:$0xff] }
  0x39   : > { %519 = vperm.xlu0 %1487, %v489_v15   ;;  %453 = vperm.xlu1 %1488, %v431_v16   ;;  %v1032_v51 = vld [vmem:[%s2128_s7 + $0x8] sm:$0xff]  ;;  %v1033_v52 = vld [vmem:[%s2128_s7 + $0x10] sm:$0xff]  ;;  %v1034_v53 = vld [vmem:[%s2128_s7 + $0x18] sm:$0xff] }
  0x3a   : > { %v1035_v54 = vld [vmem:[%s2128_s7 + $0x20] sm:$0xff]  ;;  %v1036_v55 = vld [vmem:[%s2128_s7 + $0x28] sm:$0xff]  ;;  %v1037_v56 = vld [vmem:[%s2128_s7 + $0x30] sm:$0xff] }
  0x3b   : > { %v1038_v57 = vld [vmem:[%s2128_s7 + $0x38] sm:$0xff]  ;;  %v1087_v58 = vld [vmem:[%s2129_s8] sm:$0xff]  ;;  %v1088_v59 = vld [vmem:[%s2129_s8 + $0x8] sm:$0xff] }
  0x3c   : > { %v1089_v60 = vld [vmem:[%s2129_s8 + $0x10] sm:$0xff]  ;;  %v1090_v61 = vld [vmem:[%s2129_s8 + $0x18] sm:$0xff]  ;;  %v1091_v62 = vld [vmem:[%s2129_s8 + $0x20] sm:$0xff] }
  0x3d   : > { %514 = vperm.xlu0 %1487, %v488_v17   ;;  %448 = vperm.xlu1 %1488, %v430_v18   ;;  %v1092_v63 = vld [vmem:[%s2129_s8 + $0x28] sm:$0xff]  ;;  %v1093_v0 = vld [vmem:[%s2129_s8 + $0x30] sm:$0xff]  ;;  %v1094_v1 = vld [vmem:[%s2129_s8 + $0x38] sm:$0xff] }
  0x3e   : > { %v419_v2 = vld [vmem:[%s1901_s17 + $0x38] sm:$0xff]  ;;  %v418_v6 = vld [vmem:[%s1901_s17 + $0x30] sm:$0xff]  ;;  %v417_v12 = vld [vmem:[%s1901_s17 + $0x28] sm:$0xff] }
  0x3f   : > { %v427_v3 = vadd.f32 %v419_v2, %v419_v2  ;;  %v426_v9 = vadd.f32 %v418_v6, %v418_v6  ;;  %v425_v14 = vadd.f32 %v417_v12, %v417_v12  ;;  %v416_v17 = vld [vmem:[%s1901_s17 + $0x20] sm:$0xff] }
  0x41   : > { %509 = vperm.xlu0 %1487, %v487_v19   ;;  %443 = vperm.xlu1 %1488, %v429_v20   ;;  %v424_v20 = vadd.f32 %v416_v17, %v416_v17 }
  0x45   : > { %504 = vperm.xlu0 %1487, %v486_v21   ;;  %438 = vperm.xlu1 %1488, %v428_v22  }
  0x49   : > { %499 = vperm.xlu0 %1487, %v485_v23   ;;  %494 = vperm.xlu1 %1488, %v484_v24   ;;  %v415_v23 = vld [vmem:[%s1901_s17 + $0x18] sm:$0xff] }
  0x4d   : > { %649 = vperm.xlu0 %1487, %v571_v26   ;;  %644 = vperm.xlu1 %1488, %v570_v27   ;;  %v423_v26 = vadd.f32 %v415_v23, %v415_v23 }
  0x51   : > { %639 = vperm.xlu0 %1487, %v569_v28   ;;  %634 = vperm.xlu1 %1488, %v568_v29   ;;  %v414_v29 = vld [vmem:[%s1901_s17 + $0x10] sm:$0xff] }
  0x55   : > { %629 = vperm.xlu0 %1487, %v567_v30   ;;  %624 = vperm.xlu1 %1488, %v566_v31  }
  0x59   : > { %619 = vperm.xlu0 %1487, %v565_v32   ;;  %614 = vperm.xlu1 %1488, %v564_v33   ;;  %v422_v32 = vadd.f32 %v414_v29, %v414_v29 }
  0x5d   : > { %609 = vperm.xlu0 %1487, %v563_v34   ;;  %604 = vperm.xlu1 %1488, %v562_v35   ;;  %v413_v35 = vld [vmem:[%s1901_s17 + $0x8] sm:$0xff] }
  0x61   : > { %599 = vperm.xlu0 %1487, %v561_v36   ;;  %594 = vperm.xlu1 %1488, %v560_v37   ;;  %v412_v37 = vld [vmem:[%s1901_s17] sm:$0xff]  ;;  %s1493_s17 = sshll.u32 %s1584_s24, 4  ;;  %s1494_s17 = int_to_ptr.vmem [resolvable:$false] %s1493_s17 }
  0x62   : > { %s1495_s29 = scalar_lea.vmem %s1494_s17, 2048  ;;  %p1496_p4 = scmp.lt.s32.totalorder %s2058_s13, %s1494_s17 }
  0x63   : > { %p1497_p5 = scmp.lt.s32.totalorder %s1495_s29, %s1489_s22 }
  0x65   : > { %589 = vperm.xlu0 %1487, %v559_v38   ;;  %584 = vperm.xlu1 %1488, %v558_v39   ;;  %v421_v39 = vadd.f32 %v413_v35, %v413_v35  ;;  %p1498_p6 = por %p1497_p5, %p1496_p4 }
  0x67   : > { %p1499_p7 = pnand %p1498_p6, %p1492_p3 }
  0x69   : > { %579 = vperm.xlu0 %1487, %v557_v40   ;;  %574 = vperm.xlu1 %1488, %v556_v41  }
  0x6d   : > { %880 = vperm.xlu0 %1487, %v870_v42   ;;  %885 = vperm.xlu1 %1488, %v871_v43   ;;  %v420_v43 = vadd.f32 %v412_v37, %v412_v37 }
  0x71   : > { %890 = vperm.xlu0 %1487, %v872_v44   ;;  %895 = vperm.xlu1 %1488, %v873_v45  }
  0x75   : > { %900 = vperm.xlu0 %1487, %v874_v46   ;;  %905 = vperm.xlu1 %1488, %v875_v47  }
  0x79   : > { %910 = vperm.xlu0 %1487, %v876_v48   ;;  %915 = vperm.xlu1 %1488, %v877_v49  }
  0x7d   : > { %1041 = vperm.xlu0 %1487, %v1031_v50   ;;  %1046 = vperm.xlu1 %1488, %v1032_v51   ;;  %v541_v50 = vld [vmem:[%s2122_s1 + $0x8] sm:$0xff]  ;;  %v542_v51 = vld [vmem:[%s2122_s1 + $0x10] sm:$0xff] }
  0x81   : > { %1051 = vperm.xlu0 %1487, %v1033_v52   ;;  %1056 = vperm.xlu1 %1488, %v1034_v53   ;;  %v543_v52 = vld [vmem:[%s2122_s1 + $0x18] sm:$0xff]  ;;  %v544_v53 = vld [vmem:[%s2122_s1 + $0x20] sm:$0xff] }
  0x85   : > { %1061 = vperm.xlu0 %1487, %v1035_v54   ;;  %1066 = vperm.xlu1 %1488, %v1036_v55   ;;  %v545_v54 = vld [vmem:[%s2122_s1 + $0x28] sm:$0xff]  ;;  %v546_v55 = vld [vmem:[%s2122_s1 + $0x30] sm:$0xff] }
  0x89   : > { %1071 = vperm.xlu0 %1487, %v1037_v56   ;;  %1076 = vperm.xlu1 %1488, %v1038_v57   ;;  %v547_v56 = vld [vmem:[%s2122_s1 + $0x38] sm:$0xff]  ;;  %v548_v57 = vld [vmem:[%s2122_s1 + $0x40] sm:$0xff] }
  0x8d   : > { %1097 = vperm.xlu0 %1487, %v1087_v58   ;;  %1102 = vperm.xlu1 %1488, %v1088_v59   ;;  %v549_v58 = vld [vmem:[%s2122_s1 + $0x48] sm:$0xff]  ;;  %v550_v59 = vld [vmem:[%s2122_s1 + $0x50] sm:$0xff] }
  0x91   : > { %1107 = vperm.xlu0 %1487, %v1089_v60   ;;  %1112 = vperm.xlu1 %1488, %v1090_v61   ;;  %v551_v60 = vld [vmem:[%s2122_s1 + $0x58] sm:$0xff]  ;;  %v552_v61 = vld [vmem:[%s2122_s1 + $0x60] sm:$0xff] }
  0x95   : > { %1117 = vperm.xlu0 %1487, %v1091_v62   ;;  %1122 = vperm.xlu1 %1488, %v1092_v63   ;;  %v553_v62 = vld [vmem:[%s2122_s1 + $0x68] sm:$0xff]  ;;  %v554_v63 = vld [vmem:[%s2122_s1 + $0x70] sm:$0xff] }
  0x99   : > { %1127 = vperm.xlu0 %1487, %v1093_v0   ;;  %1132 = vperm.xlu1 %1488, %v1094_v1   ;;  %v555_v0 = vld [vmem:[%s2122_s1 + $0x78] sm:$0xff]  ;;  %v862_v1 = vld [vmem:[%s2124_s3] sm:$0xff] }
  0x9a   : > { %1400 = vmatprep.mubr.f32.mxu1 %v862_v1 }
  0xa8   : > { %v530_v4 = vpop.permute.xlu1 %529  ;;  %v474_v5 = vpop.permute.xlu0 %473 }
  0xa9   : > { %v483_v7 = vmul.f32 %v474_v5, %v427_v3 }
  0xab   : > { %v1905_v8 = vadd.f32 %v530_v4, %v483_v7 }
  0xac   : > { %v469_v10 = vpop.permute.xlu0 %468  ;;  %v464_v11 = vpop.permute.xlu1 %463 }
  0xad   : > { %1328 = vmatprep.subr.mxu0 %v1905_v8  ;;  %v482_v13 = vmul.f32 %v469_v10, %v426_v9  ;;  %v481_v19 = vmul.f32 %v464_v11, %v425_v14 }
  0xae   : > { %1329 = vmatpush3.msra.mxu0 %v1905_v8 }
  0xb0   : > { %v525_v15 = vpop.permute.xlu0 %524  ;;  %v459_v16 = vpop.permute.xlu1 %458 }
  0xb1   : > { %v1911_v18 = vadd.f32 %v525_v15, %v482_v13  ;;  %v480_v25 = vmul.f32 %v459_v16, %v424_v20 }
  0xb3   : > { %1330 = vmatprep.subr.mxu0 %v1911_v18 }
  0xb4   : > { %v520_v21 = vpop.permute.xlu0 %519  ;;  %v454_v22 = vpop.permute.xlu1 %453  ;;  %1331 = vmatpush3.msra.mxu0 %v1911_v18 }
  0xb5   : > { %v1916_v24 = vadd.f32 %v520_v21, %v481_v19  ;;  %v479_v31 = vmul.f32 %v454_v22, %v423_v26 }
  0xb7   : > { %1332 = vmatprep.subr.mxu0 %v1916_v24 }
  0xb8   : > { %v515_v27 = vpop.permute.xlu0 %514  ;;  %v449_v28 = vpop.permute.xlu1 %448  ;;  %1333 = vmatpush3.msra.mxu0 %v1916_v24 }
  0xb9   : > { %v1921_v30 = vadd.f32 %v515_v27, %v480_v25  ;;  %v478_v38 = vmul.f32 %v449_v28, %v422_v32 }
  0xbb   : > { %1334 = vmatprep.subr.mxu0 %v1921_v30 }
  0xbc   : > { %v510_v33 = vpop.permute.xlu0 %509  ;;  %v444_v34 = vpop.permute.xlu1 %443  ;;  %1335 = vmatpush3.msra.mxu0 %v1921_v30 }
  0xbd   : > { %v1926_v36 = vadd.f32 %v510_v33, %v479_v31  ;;  %v477_v44 = vmul.f32 %v444_v34, %v421_v39 }
  0xbf   : > { %1336 = vmatprep.subr.mxu0 %v1926_v36 }
  0xc0   : > { %v505_v40 = vpop.permute.xlu0 %504  ;;  %v439_v41 = vpop.permute.xlu1 %438  ;;  %1337 = vmatpush3.msra.mxu0 %v1926_v36 }
  0xc1   : > { %v1931_v42 = vadd.f32 %v505_v40, %v478_v38  ;;  %v476_v47 = vmul.f32 %v439_v41, %v420_v43 }
  0xc3   : > { %1338 = vmatprep.subr.mxu0 %v1931_v42 }
  0xc4   : > { %v500_v45 = vpop.permute.xlu0 %499  ;;  %v495_v46 = vpop.permute.xlu1 %494  ;;  %1339 = vmatpush3.msra.mxu0 %v1931_v42 }
  0xc5   : > { %v1935_v48 = vadd.f32 %v500_v45, %v477_v44  ;;  %v1937_v49 = vadd.f32 %v495_v46, %v476_v47 }
  0xc7   : > { %1340 = vmatprep.subr.mxu0 %v1935_v48 }
  0xc8   : > { %1341 = vmatpush3.msra.mxu0 %v1935_v48  ;;  %v650_v9 = vpop.permute.xlu0 %649  ;;  %v645_v11 = vpop.permute.xlu1 %644 }
  0xc9   : > { %1342 = vmatprep.subr.mxu0 %v1937_v49 }
  0xca   : > { %1343 = vmatpush3.msra.mxu0 %v1937_v49 }
  0xcb   : > { %1345 = vmatmul.mubr.msk.f32.vlgmr.msra.gmra.mxu0 %vm652_vm0, %v541_v50 }
  0xcc   : > { %1347 = vmatprep.mubr.msk.f32.mxu0 %vm652_vm0, %v542_v51  ;;  %v640_v14 = vpop.permute.xlu0 %639  ;;  %v635_v16 = vpop.permute.xlu1 %634 }
  0xcf   : > { %1348 = vmatmul.mubr.msk.f32.gmra.mxu0 %vm652_vm0, %v543_v52 }
  0xd0   : > { %1350 = vmatprep.mubr.msk.f32.mxu0 %vm652_vm0, %v544_v53  ;;  %v630_v20 = vpop.permute.xlu0 %629  ;;  %v625_v22 = vpop.permute.xlu1 %624 }
  0xd3   : > { %1351 = vmatmul.mubr.msk.f32.gmra.mxu0 %vm652_vm0, %v545_v54 }
  0xd4   : > { %1353 = vmatprep.mubr.msk.f32.mxu0 %vm652_vm0, %v546_v55  ;;  %v620_v27 = vpop.permute.xlu0 %619  ;;  %v615_v33 = vpop.permute.xlu1 %614 }
  0xd7   : > { %1354 = vmatmul.mubr.msk.f32.gmra.mxu0 %vm652_vm0, %v547_v56 }
  0xd8   : > { %1356 = vmatprep.mubr.msk.f32.mxu0 %vm652_vm0, %v548_v57  ;;  %v610_v39 = vpop.permute.xlu0 %609  ;;  %v605_v43 = vpop.permute.xlu1 %604 }
  0xdb   : > { %1357 = vmatmul.mubr.msk.f32.gmra.mxu0 %vm652_vm0, %v549_v58 }
  0xdc   : > { %1359 = vmatprep.mubr.msk.f32.mxu0 %vm652_vm0, %v550_v59  ;;  %v600_v50 = vpop.permute.xlu0 %599  ;;  %v595_v53 = vpop.permute.xlu1 %594 }
  0xdf   : > { %1360 = vmatmul.mubr.msk.f32.gmra.mxu0 %vm652_vm0, %v551_v60 }
  0xe0   : > { %1362 = vmatprep.mubr.msk.f32.mxu0 %vm652_vm0, %v552_v61  ;;  %v590_v58 = vpop.permute.xlu0 %589  ;;  %v585_v61 = vpop.permute.xlu1 %584 }
  0xe3   : > { %1363 = vmatmul.mubr.msk.f32.gmra.mxu0 %vm652_vm0, %v553_v62 }
  0xe4   : > { %1365 = vmatprep.mubr.msk.f32.mxu0 %vm652_vm0, %v554_v63 }
  0xe7   : > { %1366 = vmatmul.mubr.msk.f32.gmra.mxu0 %vm652_vm0, %v555_v0 }
 0x18b   : > { %v2006_v2 = vpop.f32.mrf.mxu0 }
 0x18d   : > { %v2008_v3 = vpop.f32.mrf.mxu0 }
 0x18f   : > { %v2010_v4 = vpop.f32.mrf.mxu0 }
 0x190   : > { %v783_v62 = vadd.f32 %v2010_v4, %v590_v58 }
 0x191   : > { %v2012_v5 = vpop.f32.mrf.mxu0 }
 0x192   : > { %v778_v0 = vadd.f32 %v2012_v5, %v585_v61  ;;  %v863_v5 = vld [vmem:[%s2124_s3 + $0x8] sm:$0xff] }
 0x193   : > { %v1352_v6 = vpop.f32.mrf.mxu0 }
 0x194   : > { %v793_v56 = vadd.f32 %v1352_v6, %v600_v50 }
 0x195   : > { %v787_v7 = vpop.f32.mrf.mxu0 }
 0x196   : > { %v788_v59 = vadd.f32 %v787_v7, %v595_v53  ;;  %v851_v63 = vmax.f32 %v793_v56, 0.0  ;;  %v575_v7 = vpop.permute.xlu1 %574 }
 0x197   : > { %v1355_v10 = vpop.f32.mrf.mxu0 }
 0x198   : > { %v803_v51 = vadd.f32 %v1355_v10, %v610_v39  ;;  %v850_v1 = vmax.f32 %v788_v59, 0.0  ;;  %v849_v10 = vmax.f32 %v783_v62, 0.0 }
 0x199   : > { %v797_v12 = vpop.f32.mrf.mxu0 }
 0x19a   : > { %v798_v54 = vadd.f32 %v797_v12, %v605_v43  ;;  %v853_v57 = vmax.f32 %v803_v51, 0.0  ;;  %v848_v12 = vmax.f32 %v778_v0, 0.0 }
 0x19b   : > { %v1358_v13 = vpop.f32.mrf.mxu0 }
 0x19c   : > { %v813_v44 = vadd.f32 %v1358_v13, %v620_v27  ;;  %v852_v60 = vmax.f32 %v798_v54, 0.0 }
 0x19d   : > { %v807_v15 = vpop.f32.mrf.mxu0 }
 0x19e   : > { %v808_v46 = vadd.f32 %v807_v15, %v615_v33  ;;  %v855_v52 = vmax.f32 %v813_v44, 0.0  ;;  %v867_v15 = vld [vmem:[%s2124_s3 + $0x28] sm:$0xff] }
 0x19f   : > { %v1361_v17 = vpop.f32.mrf.mxu0 }
 0x1a0   : > { %v823_v37 = vadd.f32 %v1361_v17, %v630_v20  ;;  %v854_v55 = vmax.f32 %v808_v46, 0.0  ;;  %v869_v17 = vld [vmem:[%s2124_s3 + $0x38] sm:$0xff] }
 0x1a1   : > { %v817_v19 = vpop.f32.mrf.mxu0 }
 0x1a2   : > { %v818_v40 = vadd.f32 %v817_v19, %v625_v22  ;;  %v857_v45 = vmax.f32 %v823_v37, 0.0  ;;  %v886_v19 = vpop.permute.xlu1 %885 }
 0x1a3   : > { %v1364_v21 = vpop.f32.mrf.mxu0 }
 0x1a4   : > { %v833_v29 = vadd.f32 %v1364_v21, %v640_v14  ;;  %v856_v47 = vmax.f32 %v818_v40, 0.0  ;;  %v866_v14 = vld [vmem:[%s2124_s3 + $0x20] sm:$0xff] }
 0x1a5   : > { %v827_v23 = vpop.f32.mrf.mxu0 }
 0x1a6   : > { %v828_v34 = vadd.f32 %v827_v23, %v635_v16  ;;  %v859_v38 = vmax.f32 %v833_v29, 0.0  ;;  %v868_v16 = vld [vmem:[%s2124_s3 + $0x30] sm:$0xff]  ;;  %v896_v21 = vpop.permute.xlu1 %895 }
 0x1a7   : > { %v1367_v25 = vpop.f32.mrf.mxu0 }
 0x1a8   : > { %v843_v26 = vadd.f32 %v1367_v25, %v650_v9  ;;  %v858_v41 = vmax.f32 %v828_v34, 0.0  ;;  %v580_v9 = vpop.permute.xlu0 %579 }
 0x1a9   : > { %v837_v28 = vpop.f32.mrf.mxu0  ;;  %v773_v6 = vadd.f32 %v2006_v2, %v580_v9  ;;  %v864_v2 = vld [vmem:[%s2124_s3 + $0x10] sm:$0xff] }
 0x1aa   : > { %v861_v31 = vmax.f32 %v843_v26, 0.0  ;;  %v838_v32 = vadd.f32 %v837_v28, %v645_v11  ;;  %v768_v11 = vadd.f32 %v2008_v3, %v575_v7  ;;  %v865_v3 = vld [vmem:[%s2124_s3 + $0x18] sm:$0xff]  ;;  %v906_v23 = vpop.permute.xlu1 %905 }
 0x1ab   : > { %v847_v4 = vmax.f32 %v773_v6, 0.0 }
 0x1ac   : > { %v860_v35 = vmax.f32 %v838_v32, 0.0  ;;  %1368 = vmatprep.subr.mxu1 %v861_v31  ;;  %v846_v13 = vmax.f32 %v768_v11, 0.0  ;;  %v881_v20 = vpop.permute.xlu0 %880 }
 0x1ad   : > { %1369 = vmatpush3.msra.mxu1 %v861_v31 }
 0x1ae   : > { %1370 = vmatprep.subr.mxu1 %v860_v35  ;;  %v916_v26 = vpop.permute.xlu1 %915 }
 0x1af   : > { %1371 = vmatpush3.msra.mxu1 %v860_v35 }
 0x1b0   : > { %1372 = vmatprep.subr.mxu1 %v859_v38  ;;  %v891_v22 = vpop.permute.xlu0 %890 }
 0x1b1   : > { %1373 = vmatpush3.msra.mxu1 %v859_v38 }
 0x1b2   : > { %1374 = vmatprep.subr.mxu1 %v858_v41  ;;  %v1047_v28 = vpop.permute.xlu1 %1046 }
 0x1b3   : > { %1375 = vmatpush3.msra.mxu1 %v858_v41 }
 0x1b4   : > { %1376 = vmatprep.subr.mxu1 %v857_v45  ;;  %v901_v25 = vpop.permute.xlu0 %900 }
 0x1b5   : > { %1377 = vmatpush3.msra.mxu1 %v857_v45 }
 0x1b6   : > { %1378 = vmatprep.subr.mxu1 %v856_v47  ;;  %v1057_v31 = vpop.permute.xlu1 %1056 }
 0x1b7   : > { %1379 = vmatpush3.msra.mxu1 %v856_v47 }
 0x1b8   : > { %1380 = vmatprep.subr.mxu1 %v855_v52  ;;  %v911_v27 = vpop.permute.xlu0 %910 }
 0x1b9   : > { %1381 = vmatpush3.msra.mxu1 %v855_v52 }
 0x1ba   : > { %1382 = vmatprep.subr.mxu1 %v854_v55  ;;  %v1067_v33 = vpop.permute.xlu1 %1066 }
 0x1bb   : > { %1383 = vmatpush3.msra.mxu1 %v854_v55 }
 0x1bc   : > { %1384 = vmatprep.subr.mxu1 %v853_v57  ;;  %v1042_v29 = vpop.permute.xlu0 %1041 }
 0x1bd   : > { %1385 = vmatpush3.msra.mxu1 %v853_v57 }
 0x1be   : > { %1386 = vmatprep.subr.mxu1 %v852_v60  ;;  %v1077_v35 = vpop.permute.xlu1 %1076 }
 0x1bf   : > { %1387 = vmatpush3.msra.mxu1 %v852_v60 }
 0x1c0   : > { %1388 = vmatprep.subr.mxu1 %v851_v63  ;;  %v1052_v32 = vpop.permute.xlu0 %1051 }
 0x1c1   : > { %1389 = vmatpush3.msra.mxu1 %v851_v63 }
 0x1c2   : > { %1390 = vmatprep.subr.mxu1 %v850_v1  ;;  %v1103_v38 = vpop.permute.xlu1 %1102 }
 0x1c3   : > { %1391 = vmatpush3.msra.mxu1 %v850_v1 }
 0x1c4   : > { %1392 = vmatprep.subr.mxu1 %v849_v10  ;;  %v1062_v34 = vpop.permute.xlu0 %1061 }
 0x1c5   : > { %1393 = vmatpush3.msra.mxu1 %v849_v10 }
 0x1c6   : > { %1394 = vmatprep.subr.mxu1 %v848_v12  ;;  %v1113_v52 = vpop.permute.xlu1 %1112 }
 0x1c7   : > { %1395 = vmatpush3.msra.mxu1 %v848_v12 }
 0x1c8   : > { %1396 = vmatprep.subr.mxu1 %v847_v4  ;;  %v1072_v37 = vpop.permute.xlu0 %1071 }
 0x1c9   : > { %1397 = vmatpush3.msra.mxu1 %v847_v4 }
 0x1ca   : > { %1398 = vmatprep.subr.mxu1 %v846_v13  ;;  %v1123_v9 = vpop.permute.xlu1 %1122 }
 0x1cb   : > { %1399 = vmatpush3.msra.mxu1 %v846_v13 }
 0x1cc   : > { %1401 = vmatmul.mubr.f32.vlgmr.msra.gmra.mxu1 %v863_v5  ;;  %v1098_v41 = vpop.permute.xlu0 %1097 }
 0x1cd   : > { %1403 = vmatprep.mubr.f32.mxu1 %v864_v2 }
 0x1d0   : > { %1404 = vmatmul.mubr.f32.gmra.mxu1 %v865_v3  ;;  %v1108_v58 = vpop.permute.xlu0 %1107 }
 0x1d1   : > { %1406 = vmatprep.mubr.f32.mxu1 %v866_v14 }
 0x1d4   : > { %1407 = vmatmul.mubr.f32.gmra.mxu1 %v867_v15  ;;  %v1118_v12 = vpop.permute.xlu0 %1117  ;;  %v1133_v15 = vpop.permute.xlu1 %1132 }
 0x1d5   : > { %1409 = vmatprep.mubr.f32.mxu1 %v868_v16 }
 0x1d8   : > { %1410 = vmatmul.mubr.f32.gmra.mxu1 %v869_v17  ;;  %v1128_v17 = vpop.permute.xlu0 %1127 }
 0x28c   : > { %v1402_v39 = vpop.f32.mrf.mxu1 }
 0x28d   : > { %v990_v40 = vadd.f32 %v1402_v39, %v886_v19 }
 0x28e   : > { %v984_v43 = vpop.f32.mrf.mxu1 }
 0x28f   : > { %v1024_v44 = vadd.f32 %v990_v40, %v1935_v48  ;;  %v985_v45 = vadd.f32 %v984_v43, %v881_v20 }
 0x290   : > { %v1405_v46 = vpop.f32.mrf.mxu1 }
 0x291   : > { %v1080_v47 = vmul.f32 %v1047_v28, %v1024_v44  ;;  %v1023_v50 = vadd.f32 %v985_v45, %v1937_v49  ;;  %v1000_v51 = vadd.f32 %v1405_v46, %v896_v21 }
 0x292   : > { %v994_v53 = vpop.f32.mrf.mxu1 }
 0x293   : > { %v1136_v54 = vadd.f32 %v1103_v38, %v1080_v47  ;;  %v1079_v55 = vmul.f32 %v1042_v29, %v1023_v50  ;;  %v1026_v56 = vadd.f32 %v1000_v51, %v1926_v36  ;;  %v995_v57 = vadd.f32 %v994_v53, %v891_v22 }
 0x294   : > { %v1408_v59 = vpop.f32.mrf.mxu1 }
 0x295   : > { %1144 = vst [vmem:[%s2043_s27 + $0x8] sm:$0xff] %v1136_v54  ;;  %v1135_v48 = vadd.f32 %v1098_v41, %v1079_v55  ;;  %v1082_v60 = vmul.f32 %v1057_v31, %v1026_v56  ;;  %v1025_v49 = vadd.f32 %v995_v57, %v1931_v42  ;;  %v1010_v61 = vadd.f32 %v1408_v59, %v906_v23 }
 0x296   : > { %v1004_v62 = vpop.f32.mrf.mxu1 }
 0x297   : > { %1143 = vst [vmem:[%s2043_s27] sm:$0xff] %v1135_v48  ;;  %v1138_v36 = vadd.f32 %v1113_v52, %v1082_v60  ;;  %v1081_v63 = vmul.f32 %v1052_v32, %v1025_v49  ;;  %v1028_v0 = vadd.f32 %v1010_v61, %v1916_v24  ;;  %v1005_v1 = vadd.f32 %v1004_v62, %v901_v25 }
 0x298   : > { %v1411_v6 = vpop.f32.mrf.mxu1 }
 0x299   : > { %1146 = vst [vmem:[%s2043_s27 + $0x18] sm:$0xff] %v1138_v36  ;;  %v1137_v10 = vadd.f32 %v1108_v58, %v1081_v63  ;;  %v1084_v7 = vmul.f32 %v1067_v33, %v1028_v0  ;;  %v1027_v42 = vadd.f32 %v1005_v1, %v1921_v30  ;;  %v1020_v11 = vadd.f32 %v1411_v6, %v916_v26 }
 0x29a   : > { %v1014_v4 = vpop.f32.mrf.mxu1 }
 0x29b   : > { %1145 = vst [vmem:[%s2043_s27 + $0x10] sm:$0xff] %v1137_v10  ;;  %v1140_v13 = vadd.f32 %v1123_v9, %v1084_v7  ;;  %v1083_v5 = vmul.f32 %v1062_v34, %v1027_v42  ;;  %v1030_v24 = vadd.f32 %v1020_v11, %v1905_v8  ;;  %v1015_v2 = vadd.f32 %v1014_v4, %v911_v27 }
 0x29d   : > { %1148 = vst [vmem:[%s2043_s27 + $0x28] sm:$0xff] %v1140_v13  ;;  %v1139_v3 = vadd.f32 %v1118_v12, %v1083_v5  ;;  %v1086_v14 = vmul.f32 %v1077_v35, %v1030_v24  ;;  %v1029_v30 = vadd.f32 %v1015_v2, %v1911_v18 }
 0x29f   : > { %1147 = vst [vmem:[%s2043_s27 + $0x20] sm:$0xff] %v1139_v3  ;;  %v1142_v16 = vadd.f32 %v1133_v15, %v1086_v14  ;;  %v1085_v8 = vmul.f32 %v1072_v37, %v1029_v30 }
 0x2a1   : > { %1150 = vst [vmem:[%s2043_s27 + $0x38] sm:$0xff] %v1142_v16  ;;  %v1141_v19 = vadd.f32 %v1128_v17, %v1085_v8 }
 0x2a3   : > { %1149 = vst [vmem:[%s2043_s27 + $0x30] sm:$0xff] %v1141_v19 }
 0x2a4   : > { %1502 = shalt.err (!%p1499_p7)
}
 0x2a5   : > { %s1503_s27 = scalar_lea.hbm %s2064_s26, 1024  ;;  %s1507_s12 = scalar_lea.hbm %s2130_s9, 4096 }
 0x2a6   : > { %p1504_p10 = scmp.ne.s32.totalorder %s2064_s26, %s1503_s27  ;;  %p1508_p13 = scmp.lt.s32.totalorder %s2064_s26, %s2130_s9 }
 0x2a7   : > { %p1509_p0 = scmp.lt.s32.totalorder %s1507_s12, %s1503_s27 }
 0x2a8   : > { %p1505_p11 = pnand %p1504_p10, %p1698_p8 }
 0x2a9   : > { %p1510_p1 = por %p1509_p0, %p1508_p13 }
 0x2aa   : > { %p1506_p12 = pneg %p1505_p11 }
 0x2ac   : > { %p1511_p2 = pnand %p1510_p1, %p1506_p12 }
 0x2ae   : > { %1514 = shalt.err (!%p1511_p2)
}
 0x2af   : > { %s1585_s22 = smov 128   ;;  %s1586_s24 = smov 256  }
 0x2b0   : > { %s1587_s17 = smov 8  }
 0x2b1   : > { %1412 = dma.vmem_to_hbm [thread:$0]  (%p1698_p8), %s2058_s13, 1024, %s2064_s26, %s2070_s20, %s1585_s22, %s1586_s24, %s1587_s17  }
 0x2b2 PF: > { %p1418_p3 = scmp.ge.s32.totalorder %s1581_s16, 2  ;;  %s1181_s18 = sand.u32 1, %s1553_s30  }
 0x2b3   : > { %s1182_s27 = scalar_lea.sflag [#allocation4], %s1181_s18 }
 0x2b4   : > { %p1415_p4 = pnand %p1418_p3, %p1702_p9 }
 0x2b6   : > { %p1416_p5 = pneg %p1415_p4 }
 0x2b8   : > { %1548 = dma.done.wait (%p1416_p5), %s1182_s27, 1024  }
 0x2b9   : > { %1550 = vsyncadd (%p1416_p5), %s1182_s27, 4294966272  ;;  %s22_s16 = sadd.s32 1, %s1581_s16   ;;  %s2143_s23 = sld [smem:[#allocation6_spill]] }
 0x2ba   : > { %p19_p6 = scmp.ge.s32.totalorder %s22_s16, 6   ;;  %s2144_s26 = sld [smem:[#allocation7_spill]] }
 0x2bb   : > { %s2145_s30 = smov %s1557_s10  ;;  %s2146_s10 = smov %s1561_s11 }
 0x2bc   : > { %s2147_s11 = smov %s1710_s28  ;;  %s2148_s12 = smov %s1573_s14 }
 0x2bd   : > { %s2149_s13 = smov %s1577_s15  ;;  %21 = sbr.rel (!%p19_p6) target bundleno = 5 (0x5), region = 134 }
 0x2bf   : > { %s2150_s14 = smov %s2143_s23 }
 0x2c0   : > { %s2151_s15 = smov %s2144_s26 }
 0x2c2   :  { %1187 = vsyncpa [#allocation4], 1 }
 0x2c3   :  { %1189 = vsyncpa [#allocation4 + $0x1], 1 }

</bundles_post_ra>
